<compile_context>
chip_gen: v7x
topology: tpu7x:2x2x1
jax: 0.10.0
libtpu: 0.0.40
codegen_flags: <defaults>
</compile_context>

<pallas_src>
import jax
import jax.numpy as jnp
from jax.experimental import pallas as pl
from jax.experimental.pallas import tpu as pltpu

_POSE_DIM = 45
_BETA_DIM = 10
_TRANS_DIM = 3
_SLAB_SHAPE = (8, 128)  # one f32 vreg tile: lane- and sublane-dense
_POSE_ROW, _BETA_ROW, _TRANS_ROW = 0, 1, 2


def _smpl_slab_kernel(slab_ref, out_ref):
    # Single full-tile, unmasked copy of the fused parameter slab.
    out_ref[...] = slab_ref[...]


_full_spec = pl.BlockSpec(memory_space=pltpu.VMEM)

# Built once at import time: no grid, single 4 KiB input / 4 KiB output,
# aliased buffers, advisory zero-cost estimate for the XLA scheduler.
_smpl_identity = pl.pallas_call(
    _smpl_slab_kernel,
    out_shape=jax.ShapeDtypeStruct(_SLAB_SHAPE, jnp.float32),
    in_specs=[_full_spec],
    out_specs=_full_spec,
    input_output_aliases={0: 0},
    cost_estimate=pl.CostEstimate(flops=0, transcendentals=0, bytes_accessed=8192),
)


@jax.jit
def optimization_smpl_forward(param_slab):
    """Pallas equivalent of OptimizationSMPL.forward().

    Takes the canonical packed (8, 128) parameter slab and returns
    (pose, beta, trans) views with the module's output shapes.
    """
    out_slab = _smpl_identity(param_slab)
    pose_out = out_slab[_POSE_ROW:_POSE_ROW + 1, :_POSE_DIM]     # (1, 45)
    beta_out = out_slab[_BETA_ROW:_BETA_ROW + 1, :_BETA_DIM]     # (1, 10)
    trans_out = out_slab[_TRANS_ROW:_TRANS_ROW + 1, :_TRANS_DIM]  # (1, 3)
    return pose_out, beta_out, trans_out


def init_optimization_smpl_params():
    """Deterministic init matching OptimizationSMPL.__init__, in packed slab form.

    Row 0: pose (45 lanes, zeros); row 1: beta (10 lanes, -0.005);
    row 2: trans (3 lanes, zeros).  Built ONCE; the optimizer state should be
    kept in this packed form so the forward never re-packs.
    """
    slab = jnp.zeros(_SLAB_SHAPE, jnp.float32)
    slab = slab.at[_BETA_ROW, :_BETA_DIM].set(-0.5 / 100.0)
    return slab


def pack_smpl_params(pose, beta, trans):
    """Optional helper: pack unpacked (1,45)/(1,10)/(1,3) params into the slab.

    Only needed when interoperating with code that stores the parameters
    unpacked; the canonical path keeps the slab from init_optimization_smpl_params.
    """
    slab = jnp.zeros(_SLAB_SHAPE, jnp.float32)
    slab = slab.at[_POSE_ROW, :_POSE_DIM].set(pose[0].astype(jnp.float32))
    slab = slab.at[_BETA_ROW, :_BETA_DIM].set(beta[0].astype(jnp.float32))
    slab = slab.at[_TRANS_ROW, :_TRANS_DIM].set(trans[0].astype(jnp.float32))
    return slab


if __name__ == "__main__":
    # forward() takes no inputs; key kept only for the deterministic-setup convention.
    _key = jax.random.PRNGKey(0)

    param_slab = init_optimization_smpl_params()

    out_pose, out_beta, out_trans = optimization_smpl_forward(param_slab)
    jax.block_until_ready((out_pose, out_beta, out_trans))

    # Verify semantics: forward returns the parameters unchanged.
    assert out_pose.shape == (1, 45) and out_pose.dtype == jnp.float32
    assert out_beta.shape == (1, 10) and out_beta.dtype == jnp.float32
    assert out_trans.shape == (1, 3) and out_trans.dtype == jnp.float32
    assert bool(jnp.all(out_pose == 0.0))
    assert bool(jnp.allclose(out_beta, -0.005))
    assert bool(jnp.all(out_trans == 0.0))

    # Also check the interop packing path round-trips correctly.
    repacked = pack_smpl_params(out_pose, out_beta, out_trans)
    assert bool(jnp.allclose(repacked, param_slab))

    print("KERNEL_OK")
</pallas_src>

<mosaic_0001>
module attributes {stable_mosaic.version = 11 : i64} {
  func.func @_smpl_slab_kernel(%arg0: memref<8x128xf32, #tpu.memory_space<vmem>>, %arg1: memref<8x128xf32, #tpu.memory_space<vmem>>) attributes {dimension_semantics = [], scalar_prefetch = 0 : i64, scratch_operands = 0 : i64, tpu.core_type = #tpu.core_type<tc>} {
    %c0 = arith.constant 0 : index
    %c0_0 = arith.constant 0 : index
    %0 = vector.load %arg0[%c0, %c0_0] : memref<8x128xf32, #tpu.memory_space<vmem>>, vector<8x128xf32>
    %c0_1 = arith.constant 0 : index
    %c0_2 = arith.constant 0 : index
    %1 = vector.load %arg1[%c0_1, %c0_2] : memref<8x128xf32, #tpu.memory_space<vmem>>, vector<8x128xf32>
    tpu.vector_store %arg1[%c0_1, %c0_2], %0 {strides = array<i32>} : memref<8x128xf32, #tpu.memory_space<vmem>>, vector<8x128xf32>,
    return
  }
}

</mosaic_0001>

<bundles_post_ra>
// kernel: optimization_smpl_forward.1
= control target key start
LH: loop header
LB: loop body
LE: loop exit
PB: predicated region body
PF: predicated region fallthrough
CT: control target
= control target key end

     0   :  { %s30_s0 = inlined_call_operand.vmem [shape: f32[8,128], index: 0, kind: input, shape index: {}, may-alias: {0,1}]   ;;  %s31_s1 = inlined_call_operand.vmem [shape: f32[8,128], index: 1, kind: output, shape index: {}, may-alias: {0,1}]  }
   0x1   :  { %v8_v0 = vld [vmem:[%s30_s0] sm:$0xff] }
   0x2   :  { %9 = vst [vmem:[%s31_s1] sm:$0xff] %v8_v0 }

</bundles_post_ra>
